<compile_context>
chip_gen: v7x
topology: tpu7x:2x2x1
jax: 0.10.0
libtpu: 0.0.40
codegen_flags: <defaults>
</compile_context>

<pallas_src>
import functools

import jax
import jax.numpy as jnp
from jax import lax
from jax.experimental import pallas as pl
from jax.experimental.pallas import tpu as pltpu


def _mlp_kernel(x_ref,
                w1_ref, b1_ref,
                w2_ref, b2_ref,
                w3_ref, b3_ref,
                w4_ref, b4_ref,
                o_ref, *, fc4_as_vpu):
    # x_ref : (block_b, in_dim)       -- natural torch layout, batch on sublanes
    # w1_ref: (W, in_dim)
    # bN_ref: (out, block_b)          -- pre-broadcast to lane width
    # w4_ref: (W, block_b) if fc4_as_vpu else (out_dim, W)
    # o_ref : (out_dim, block_b)      -- lane-dense output tile

    # fc1: contract the last axes of (W, in_dim) and (block_b, in_dim)
    # -> (W, block_b); batch lands on lanes with no transpose anywhere.
    h = lax.dot_general(w1_ref[...], x_ref[...],
                        (((1,), (1,)), ((), ())),
                        preferred_element_type=jnp.float32)
    h = jnp.maximum(h + b1_ref[...], 0.0)
    h = h * h          # mult1([x, x])
    h = h * h          # mult2([x, x])

    # fc2 + relu, then mult3([x, x])  (MXU: (W, W) @ (W, block_b))
    h = jnp.dot(w2_ref[...], h, preferred_element_type=jnp.float32)
    h = jnp.maximum(h + b2_ref[...], 0.0)
    h = h * h

    # fc3 + relu
    h = jnp.dot(w3_ref[...], h, preferred_element_type=jnp.float32)
    h = jnp.maximum(h + b3_ref[...], 0.0)

    # fc4 (no activation)
    if fc4_as_vpu:
        # (1, out) output: VPU multiply by pre-broadcast w4 column + sublane
        # reduction over the 32 features; avoids a degenerate M=1 MXU matmul.
        out = jnp.sum(h * w4_ref[...], axis=0, keepdims=True) + b4_ref[...]
    else:
        out = jnp.dot(w4_ref[...], h,
                      preferred_element_type=jnp.float32) + b4_ref[...]
    o_ref[...] = out.astype(o_ref.dtype)


@functools.partial(jax.jit, static_argnames=("block_b",))
def neural_network_f(x, params, block_b=None):
    """x: (B, INPUT_dim) f32.  params: torch-layout weights wN (out, in), biases bN (out, 1)."""
    B, in_dim = x.shape
    w1, b1 = params["w1"], params["b1"]
    w2, b2 = params["w2"], params["b2"]
    w3, b3 = params["w3"], params["b3"]
    w4, b4 = params["w4"], params["b4"]
    out_dim, width = w4.shape

    # Batch tile (lane width). Keep >= 2 grid steps once B >= 256 (v7x dual TC)
    # and cap at 512 lanes so intermediates stay in the register file.
    if block_b is None:
        if B < 256:
            block_b = B
        else:
            block_b = min(512, max(128, ((B // 2) // 128) * 128))
    if block_b != B and block_b % 128 != 0:
        raise ValueError("block_b must equal B or be a multiple of 128")

    # Pre-broadcast biases (and the fc4 column for out_dim == 1) to lane width
    # so per-step adds/multiplies are plain VALU ops.
    b1b = jnp.broadcast_to(b1, (width, block_b))
    b2b = jnp.broadcast_to(b2, (width, block_b))
    b3b = jnp.broadcast_to(b3, (width, block_b))
    b4b = jnp.broadcast_to(b4, (out_dim, block_b))
    fc4_as_vpu = out_dim == 1
    if fc4_as_vpu:
        w4x = jnp.broadcast_to(w4.reshape(width, 1), (width, block_b))
    else:
        w4x = w4

    grid = (pl.cdiv(B, block_b),)

    def resident(a):
        # Same single block every grid step -> stays VMEM-resident.
        return pl.BlockSpec(a.shape, lambda i: (0,) * a.ndim)

    out_t = pl.pallas_call(
        functools.partial(_mlp_kernel, fc4_as_vpu=fc4_as_vpu),
        out_shape=jax.ShapeDtypeStruct((out_dim, B), x.dtype),
        grid_spec=pltpu.PrefetchScalarGridSpec(
            num_scalar_prefetch=0,
            grid=grid,
            in_specs=[
                pl.BlockSpec((block_b, in_dim), lambda i: (i, 0)),
                resident(w1), resident(b1b),
                resident(w2), resident(b2b),
                resident(w3), resident(b3b),
                resident(w4x), resident(b4b),
            ],
            out_specs=pl.BlockSpec((out_dim, block_b), lambda i: (0, i)),
        ),
        compiler_params=pltpu.CompilerParams(
            dimension_semantics=("parallel",)),
    )(x, w1, b1b, w2, b2b, w3, b3b, w4x, b4b)

    # (1, B) -> (B, 1) is a pure reshape (same element order); general out_dim
    # falls back to a transpose.
    if out_dim == 1:
        return out_t.reshape(B, 1)
    return out_t.T


def init_params(key, input_dim, output_dim, width):
    """Deterministic init matching the PyTorch module's parameter shapes.

    Weights: torch layout (out_features, in_features), Xavier-normal.
    Biases: torch default U(-1/sqrt(fan_in), 1/sqrt(fan_in)), stored (out, 1).
    """
    def xavier_normal(k, fan_out, fan_in):
        std = (2.0 / (fan_in + fan_out)) ** 0.5
        return std * jax.random.normal(k, (fan_out, fan_in), jnp.float32)

    def bias(k, fan_out, fan_in):
        bound = 1.0 / (fan_in ** 0.5)
        return jax.random.uniform(k, (fan_out, 1), jnp.float32, -bound, bound)

    ks = jax.random.split(key, 8)
    dims = [(width, input_dim), (width, width), (width, width), (output_dim, width)]
    params = {}
    for i, (fo, fi) in enumerate(dims, start=1):
        params[f"w{i}"] = xavier_normal(ks[2 * (i - 1)], fo, fi)
        params[f"b{i}"] = bias(ks[2 * (i - 1) + 1], fo, fi)
    return params


def reference_forward(x, p):
    # Pure-JAX reference in the original (batch, feature) layout.
    h = jnp.maximum(x @ p["w1"].T + p["b1"].T, 0.0)
    h = h * h
    h = h * h
    h = jnp.maximum(h @ p["w2"].T + p["b2"].T, 0.0)
    h = h * h
    h = jnp.maximum(h @ p["w3"].T + p["b3"].T, 0.0)
    return h @ p["w4"].T + p["b4"].T


if __name__ == "__main__":
    INPUT_dim, OUTPUT_dim, WIDTH = 3, 1, 32

    key = jax.random.PRNGKey(0)
    kx, kp = jax.random.split(key)
    params = init_params(kp, INPUT_dim, OUTPUT_dim, WIDTH)

    # Case 1: tiny batch -> single block, grid=(1,).
    x_small = jax.random.normal(kx, (8, INPUT_dim), jnp.float32)
    out_small = jax.block_until_ready(neural_network_f(x_small, params))
    ref_small = reference_forward(x_small, params)
    assert out_small.shape == (8, OUTPUT_dim)
    assert jnp.allclose(out_small, ref_small, atol=1e-4, rtol=1e-4)

    # Case 2: larger batch -> default heuristic gives a 2-step "parallel" grid
    # (block_b=256), lane-dense 256-wide tiles.
    x_big = jax.random.normal(kx, (512, INPUT_dim), jnp.float32)
    out_big = jax.block_until_ready(neural_network_f(x_big, params))
    ref_big = reference_forward(x_big, params)
    assert out_big.shape == (512, OUTPUT_dim)
    assert jnp.allclose(out_big, ref_big, atol=1e-4, rtol=1e-4)

    # Case 3: explicit 128-lane tiles -> 4-step grid, exercises the pipeline.
    out_big128 = jax.block_until_ready(neural_network_f(x_big, params, block_b=128))
    assert jnp.allclose(out_big128, ref_big, atol=1e-4, rtol=1e-4)

    print("KERNEL_OK")
</pallas_src>

<mosaic_0001>
module attributes {stable_mosaic.version = 11 : i64} {
  func.func @_mlp_kernel(%arg0: i32, %arg1: memref<8x3xf32, #tpu.memory_space<vmem>>, %arg2: memref<32x3xf32, #tpu.memory_space<vmem>>, %arg3: memref<32x8xf32, #tpu.memory_space<vmem>>, %arg4: memref<32x32xf32, #tpu.memory_space<vmem>>, %arg5: memref<32x8xf32, #tpu.memory_space<vmem>>, %arg6: memref<32x32xf32, #tpu.memory_space<vmem>>, %arg7: memref<32x8xf32, #tpu.memory_space<vmem>>, %arg8: memref<32x8xf32, #tpu.memory_space<vmem>>, %arg9: memref<1x8xf32, #tpu.memory_space<vmem>>, %arg10: memref<1x8xf32, #tpu.memory_space<vmem>>) attributes {dimension_semantics = [#tpu.dimension_semantics<parallel>], iteration_bounds = array<i64: 1>, scalar_prefetch = 0 : i64, scratch_operands = 0 : i64, tpu.core_type = #tpu.core_type<tc>, window_params = [{transform_indices = @transform_0, window_bounds = array<i64: 8, 3>}, {pipeline_mode = #tpu.pipeline_mode<synchronous>, transform_indices = @transform_1, window_bounds = array<i64: 32, 3>}, {pipeline_mode = #tpu.pipeline_mode<synchronous>, transform_indices = @transform_2, window_bounds = array<i64: 32, 8>}, {pipeline_mode = #tpu.pipeline_mode<synchronous>, transform_indices = @transform_3, window_bounds = array<i64: 32, 32>}, {pipeline_mode = #tpu.pipeline_mode<synchronous>, transform_indices = @transform_4, window_bounds = array<i64: 32, 8>}, {pipeline_mode = #tpu.pipeline_mode<synchronous>, transform_indices = @transform_5, window_bounds = array<i64: 32, 32>}, {pipeline_mode = #tpu.pipeline_mode<synchronous>, transform_indices = @transform_6, window_bounds = array<i64: 32, 8>}, {pipeline_mode = #tpu.pipeline_mode<synchronous>, transform_indices = @transform_7, window_bounds = array<i64: 32, 8>}, {pipeline_mode = #tpu.pipeline_mode<synchronous>, transform_indices = @transform_8, window_bounds = array<i64: 1, 8>}, {transform_indices = @transform_9, window_bounds = array<i64: 1, 8>}]} {
    %c0 = arith.constant 0 : index
    %c0_0 = arith.constant 0 : index
    %0 = vector.load %arg2[%c0, %c0_0] : memref<32x3xf32, #tpu.memory_space<vmem>>, vector<32x3xf32>
    %c0_1 = arith.constant 0 : index
    %c0_2 = arith.constant 0 : index
    %1 = vector.load %arg1[%c0_1, %c0_2] : memref<8x3xf32, #tpu.memory_space<vmem>>, vector<8x3xf32>
    %cst = arith.constant dense<0.000000e+00> : vector<32x8xf32>
    %2 = tpu.matmul %0, %1, %cst {dimension_numbers = #tpu.dot_dimension_numbers<[1], [1], [0], [0], [0, 0, 1, 0], [], []>} : vector<32x3xf32>, vector<8x3xf32>, vector<32x8xf32> -> vector<32x8xf32>
    %c0_3 = arith.constant 0 : index
    %c0_4 = arith.constant 0 : index
    %3 = vector.load %arg3[%c0_3, %c0_4] : memref<32x8xf32, #tpu.memory_space<vmem>>, vector<32x8xf32>
    %4 = arith.addf %2, %3 : vector<32x8xf32>
    %cst_5 = arith.constant 0.000000e+00 : f32
    %5 = vector.broadcast %cst_5 : f32 to vector<32x8xf32>
    %6 = arith.maximumf %4, %5 : vector<32x8xf32>
    %7 = arith.mulf %6, %6 : vector<32x8xf32>
    %8 = arith.mulf %7, %7 : vector<32x8xf32>
    %c0_6 = arith.constant 0 : index
    %c0_7 = arith.constant 0 : index
    %9 = vector.load %arg4[%c0_6, %c0_7] : memref<32x32xf32, #tpu.memory_space<vmem>>, vector<32x32xf32>
    %cst_8 = arith.constant dense<0.000000e+00> : vector<32x8xf32>
    %10 = tpu.matmul %9, %8, %cst_8 {dimension_numbers = #tpu.dot_dimension_numbers<[1], [0], [0], [1], [0, 0, 1, 1], [], []>} : vector<32x32xf32>, vector<32x8xf32>, vector<32x8xf32> -> vector<32x8xf32>
    %c0_9 = arith.constant 0 : index
    %c0_10 = arith.constant 0 : index
    %11 = vector.load %arg5[%c0_9, %c0_10] : memref<32x8xf32, #tpu.memory_space<vmem>>, vector<32x8xf32>
    %12 = arith.addf %10, %11 : vector<32x8xf32>
    %cst_11 = arith.constant 0.000000e+00 : f32
    %13 = vector.broadcast %cst_11 : f32 to vector<32x8xf32>
    %14 = arith.maximumf %12, %13 : vector<32x8xf32>
    %15 = arith.mulf %14, %14 : vector<32x8xf32>
    %c0_12 = arith.constant 0 : index
    %c0_13 = arith.constant 0 : index
    %16 = vector.load %arg6[%c0_12, %c0_13] : memref<32x32xf32, #tpu.memory_space<vmem>>, vector<32x32xf32>
    %cst_14 = arith.constant dense<0.000000e+00> : vector<32x8xf32>
    %17 = tpu.matmul %16, %15, %cst_14 {dimension_numbers = #tpu.dot_dimension_numbers<[1], [0], [0], [1], [0, 0, 1, 1], [], []>} : vector<32x32xf32>, vector<32x8xf32>, vector<32x8xf32> -> vector<32x8xf32>
    %c0_15 = arith.constant 0 : index
    %c0_16 = arith.constant 0 : index
    %18 = vector.load %arg7[%c0_15, %c0_16] : memref<32x8xf32, #tpu.memory_space<vmem>>, vector<32x8xf32>
    %19 = arith.addf %17, %18 : vector<32x8xf32>
    %cst_17 = arith.constant 0.000000e+00 : f32
    %20 = vector.broadcast %cst_17 : f32 to vector<32x8xf32>
    %21 = arith.maximumf %19, %20 : vector<32x8xf32>
    %c0_18 = arith.constant 0 : index
    %c0_19 = arith.constant 0 : index
    %22 = vector.load %arg8[%c0_18, %c0_19] : memref<32x8xf32, #tpu.memory_space<vmem>>, vector<32x8xf32>
    %23 = arith.mulf %21, %22 : vector<32x8xf32>
    %cst_20 = arith.constant dense<0.000000e+00> : vector<8xf32>
    %24 = vector.multi_reduction <add>, %23, %cst_20 [0] : vector<32x8xf32> to vector<8xf32>
    %25 = vector.shape_cast %24 : vector<8xf32> to vector<1x8xf32>
    %c0_21 = arith.constant 0 : index
    %c0_22 = arith.constant 0 : index
    %26 = vector.load %arg9[%c0_21, %c0_22] : memref<1x8xf32, #tpu.memory_space<vmem>>, vector<1x8xf32>
    %27 = arith.addf %25, %26 : vector<1x8xf32>
    %c0_23 = arith.constant 0 : index
    %c0_24 = arith.constant 0 : index
    %28 = vector.load %arg10[%c0_23, %c0_24] : memref<1x8xf32, #tpu.memory_space<vmem>>, vector<1x8xf32>
    tpu.vector_store %arg10[%c0_23, %c0_24], %27 {strides = array<i32>} : memref<1x8xf32, #tpu.memory_space<vmem>>, vector<1x8xf32>,
    return
  }
  func.func @transform_0(%arg0: i32) -> (i32, i32) {
    %c0_i32 = arith.constant 0 : i32
    %c0_i32_0 = arith.constant 0 : i32
    return %arg0, %c0_i32 : i32, i32
  }
  func.func @transform_1(%arg0: i32) -> (i32, i32) {
    %c0_i32 = arith.constant 0 : i32
    %c0_i32_0 = arith.constant 0 : i32
    %c0_i32_1 = arith.constant 0 : i32
    return %c0_i32, %c0_i32_0 : i32, i32
  }
  func.func @transform_2(%arg0: i32) -> (i32, i32) {
    %c0_i32 = arith.constant 0 : i32
    %c0_i32_0 = arith.constant 0 : i32
    %c0_i32_1 = arith.constant 0 : i32
    return %c0_i32, %c0_i32_0 : i32, i32
  }
  func.func @transform_3(%arg0: i32) -> (i32, i32) {
    %c0_i32 = arith.constant 0 : i32
    %c0_i32_0 = arith.constant 0 : i32
    %c0_i32_1 = arith.constant 0 : i32
    return %c0_i32, %c0_i32_0 : i32, i32
  }
  func.func @transform_4(%arg0: i32) -> (i32, i32) {
    %c0_i32 = arith.constant 0 : i32
    %c0_i32_0 = arith.constant 0 : i32
    %c0_i32_1 = arith.constant 0 : i32
    return %c0_i32, %c0_i32_0 : i32, i32
  }
  func.func @transform_5(%arg0: i32) -> (i32, i32) {
    %c0_i32 = arith.constant 0 : i32
    %c0_i32_0 = arith.constant 0 : i32
    %c0_i32_1 = arith.constant 0 : i32
    return %c0_i32, %c0_i32_0 : i32, i32
  }
  func.func @transform_6(%arg0: i32) -> (i32, i32) {
    %c0_i32 = arith.constant 0 : i32
    %c0_i32_0 = arith.constant 0 : i32
    %c0_i32_1 = arith.constant 0 : i32
    return %c0_i32, %c0_i32_0 : i32, i32
  }
  func.func @transform_7(%arg0: i32) -> (i32, i32) {
    %c0_i32 = arith.constant 0 : i32
    %c0_i32_0 = arith.constant 0 : i32
    %c0_i32_1 = arith.constant 0 : i32
    return %c0_i32, %c0_i32_0 : i32, i32
  }
  func.func @transform_8(%arg0: i32) -> (i32, i32) {
    %c0_i32 = arith.constant 0 : i32
    %c0_i32_0 = arith.constant 0 : i32
    %c0_i32_1 = arith.constant 0 : i32
    return %c0_i32, %c0_i32_0 : i32, i32
  }
  func.func @transform_9(%arg0: i32) -> (i32, i32) {
    %c0_i32 = arith.constant 0 : i32
    %c0_i32_0 = arith.constant 0 : i32
    return %c0_i32, %arg0 : i32, i32
  }
}

</mosaic_0001>

<bundles_post_ra>
// kernel: neural_network_f.1
= control target key start
LH: loop header
LB: loop body
LE: loop exit
PB: predicated region body
PF: predicated region fallthrough
CT: control target
= control target key end

     0   :  { %vm42_vm0 = vcmask 23552   ;;  %s694_s0 = inlined_call_operand.vmem [shape: f32[8,3], index: 0, kind: input, shape index: {}]   ;;  %s695_s1 = inlined_call_operand.vmem [shape: f32[32,3], index: 1, kind: input, shape index: {}]   ;;  %s696_s2 = inlined_call_operand.vmem [shape: f32[32,8], index: 2, kind: input, shape index: {}]   ;;  %s697_s3 = inlined_call_operand.vmem [shape: f32[32,32], index: 3, kind: input, shape index: {}]   ;;  %s698_s4 = inlined_call_operand.vmem [shape: f32[32,8], index: 4, kind: input, shape index: {}]   ;;  %s699_s5 = inlined_call_operand.vmem [shape: f32[32,32], index: 5, kind: input, shape index: {}]   ;;  %s700_s6 = inlined_call_operand.vmem [shape: f32[32,8], index: 6, kind: input, shape index: {}]   ;;  %s701_s7 = inlined_call_operand.vmem [shape: f32[32,8], index: 7, kind: input, shape index: {}]   ;;  %s702_s8 = inlined_call_operand.vmem [shape: f32[1,8], index: 8, kind: input, shape index: {}]   ;;  %s703_s9 = inlined_call_operand.hbm [shape: f32[1,8], index: 9, kind: output, shape index: {}]  }
   0x1   :  { %v37_v0 = vld [vmem:[%s694_s0] sm:$0xff]  ;;  %v34_v2 = vld [vmem:[%s695_s1 + $0x8] sm:$0xff] }
   0x2   :  { %v33_v1 = vld [vmem:[%s695_s1] sm:$0xff]  ;;  %452 = vmatprep.subr.msk.mxu0 %vm42_vm0, %v37_v0 }
   0x3   :  { %454 = vmatprep.mubr.msk.f32.mxu0 %vm42_vm0, %v33_v1  ;;  %453 = vmatpush3.xpose.msk.msra.mxu0 %vm42_vm0, %v37_v0 }
   0x4   :  { %14 = vsyncpa [#allocation3], 0  ;;  %v35_v3 = vld [vmem:[%s695_s1 + $0x10] sm:$0xff]  ;;  %v36_v4 = vld [vmem:[%s695_s1 + $0x18] sm:$0xff]  ;;  %vm163_vm1 = vcmask 261120   ;;  %vm386_vm2 = vcmask 64512  }
   0x5   :  { %v155_v5 = vld [vmem:[%s697_s3] sm:$0xff]  ;;  %v39_v6 = vld [vmem:[%s696_s2 + $0x8] sm:$0xff]  ;;  %v41_v12 = vld [vmem:[%s696_s2 + $0x18] sm:$0xff]  ;;  %vm402_vm3 = vcmask 57344  }
   0x6   :  { %455 = vmatmul.mubr.msk.f32.vlgmr.msra.gmra.mrb[0].mxu0 %vm42_vm0, %v34_v2  ;;  %468 = vmatprep.mubr.msk.f32.mxu1 %vm163_vm1, %v155_v5  ;;  %v38_v7 = vld [vmem:[%s696_s2] sm:$0xff]  ;;  %v40_v14 = vld [vmem:[%s696_s2 + $0x10] sm:$0xff]  ;;  %v156_v32 = vld [vmem:[%s697_s3 + $0x8] sm:$0xff] }
   0x7   :  { %457 = vmatprep.mubr.msk.f32.mxu0 %vm42_vm0, %v35_v3  ;;  %v157_v33 = vld [vmem:[%s697_s3 + $0x10] sm:$0xff]  ;;  %v158_v34 = vld [vmem:[%s697_s3 + $0x18] sm:$0xff]  ;;  %v269_v35 = vld [vmem:[%s699_s5] sm:$0xff] }
   0x8   :  { %v160_v36 = vld [vmem:[%s698_s4 + $0x8] sm:$0xff]  ;;  %v159_v37 = vld [vmem:[%s698_s4] sm:$0xff]  ;;  %v162_v42 = vld [vmem:[%s698_s4 + $0x18] sm:$0xff] }
   0x9   :  { %v161_v44 = vld [vmem:[%s698_s4 + $0x10] sm:$0xff]  ;;  %v270_v58 = vld [vmem:[%s699_s5 + $0x8] sm:$0xff]  ;;  %v272_v60 = vld [vmem:[%s699_s5 + $0x18] sm:$0xff] }
   0xa   :  { %458 = vmatmul.mubr.msk.f32.gmra.mrb[2].mxu0 %vm42_vm0, %v36_v4  ;;  %v271_v59 = vld [vmem:[%s699_s5 + $0x10] sm:$0xff]  ;;  %v274_v61 = vld [vmem:[%s700_s6 + $0x8] sm:$0xff]  ;;  %v273_v62 = vld [vmem:[%s700_s6] sm:$0xff] }
   0xb   :  { %482 = vmatprep.mubr.msk.f32.mxu0 %vm163_vm1, %v269_v35  ;;  %v379_v2 = vld [vmem:[%s701_s7 + $0x8] sm:$0xff]  ;;  %v276_v4 = vld [vmem:[%s700_s6 + $0x18] sm:$0xff] }
  0xd9   :  { %v456_v8 = vpop.f32.mrb[0].mxu0 }
  0xda   :  { %v130_v9 = vadd.f32 %v456_v8, %v39_v6  ;;  %v124_v10 = vpop.f32.mrb[1].mxu0  ;;  %v378_v6 = vld [vmem:[%s701_s7] sm:$0xff] }
  0xdb   :  { %v125_v11 = vadd.f32 %v124_v10, %v38_v7  ;;  %v275_v7 = vld [vmem:[%s700_s6 + $0x10] sm:$0xff] }
  0xdc   :  { %v144_v13 = vmax.f32 %v130_v9, 0.0 }
  0xdd   :  { %v143_v15 = vmax.f32 %v125_v11, 0.0  ;;  %v459_v16 = vpop.f32.mrb[2].mxu0 }
  0xde   :  { %v148_v17 = vmul.f32 %v144_v13, %v144_v13  ;;  %v140_v18 = vadd.f32 %v459_v16, %v41_v12  ;;  %v134_v19 = vpop.f32.mrb[3].mxu0 }
  0xdf   :  { %v147_v20 = vmul.f32 %v143_v15, %v143_v15  ;;  %v135_v21 = vadd.f32 %v134_v19, %v40_v14 }
  0xe0   :  { %v152_v22 = vmul.f32 %v148_v17, %v148_v17  ;;  %v146_v23 = vmax.f32 %v140_v18, 0.0  ;;  %v381_v17 = vld [vmem:[%s701_s7 + $0x18] sm:$0xff]  ;;  %v380_v18 = vld [vmem:[%s701_s7 + $0x10] sm:$0xff]  ;;  %s529_s7 = smov [#allocation2]  }
  0xe1   :  { %v151_v24 = vmul.f32 %v147_v20, %v147_v20  ;;  %v145_v25 = vmax.f32 %v135_v21, 0.0  ;;  %s410_s3 = sshll.u32 %s529_s7, 4  ;;  %s411_s3 = int_to_ptr.vmem [resolvable:$true] %s410_s3 }
  0xe2   :  { %v150_v26 = vmul.f32 %v146_v23, %v146_v23  ;;  %s505_s0 = scalar_lea.vmem %s411_s3, 16  ;;  %s509_s17 = scalar_lea.vmem %s411_s3, 32 }
  0xe3   :  { %v149_v27 = vmul.f32 %v145_v25, %v145_v25  ;;  %v488_v28 = vpack.c.bf16 %v152_v22, %v151_v24  ;;  %p506_p0 = scmp.ne.s32.totalorder %s411_s3, %s505_s0  ;;  %p510_p1 = scmp.lt.s32.totalorder %s411_s3, %s411_s3 }
  0xe4   :  { %v154_v29 = vmul.f32 %v150_v26, %v150_v26  ;;  %p511_p2 = scmp.lt.s32.totalorder %s509_s17, %s505_s0 }
  0xe5   :  { %v153_v30 = vmul.f32 %v149_v27, %v149_v27  ;;  %489 = vmatprep.subr.bf16.mxu1 %v488_v28 }
  0xe6   :  { %491 = vmatpush3.bf16.msra.mxu1 %v488_v28  ;;  %p512_p3 = por %p511_p2, %p510_p1 }
  0xe7   :  { %v492_v31 = vpack.c.bf16 %v154_v29, %v153_v30 }
  0xe8   :  { %p513_p4 = pnand %p512_p3, %p506_p0 }
  0xe9   :  { %493 = vmatprep.subr.bf16.mxu1 %v492_v31 }
  0xea   :  { %495 = vmatpush3.bf16.msra.mxu1 %v492_v31 }
  0xed   :  { %469 = vmatmul.mubr.msk.f32.vlgmr.msra.gmra.mrb[0].mxu1 %vm163_vm1, %v156_v32 }
  0xee   :  { %471 = vmatprep.mubr.msk.f32.mxu1 %vm163_vm1, %v157_v33  ;;  %v400_v33 = vld [vmem:[%s702_s8] sm:$0x1] }
  0xf1   :  { %472 = vmatmul.mubr.msk.f32.gmra.mrb[2].mxu1 %vm163_vm1, %v158_v34 }
 0x1c0   :  { %v470_v38 = vpop.f32.mrb[0].mxu1 }
 0x1c1   :  { %v248_v39 = vadd.f32 %v470_v38, %v160_v36  ;;  %v242_v40 = vpop.f32.mrb[1].mxu1 }
 0x1c2   :  { %v243_v41 = vadd.f32 %v242_v40, %v159_v37 }
 0x1c3   :  { %v262_v43 = vmax.f32 %v248_v39, 0.0 }
 0x1c4   :  { %v261_v45 = vmax.f32 %v243_v41, 0.0  ;;  %v473_v46 = vpop.f32.mrb[2].mxu1 }
 0x1c5   :  { %v266_v47 = vmul.f32 %v262_v43, %v262_v43  ;;  %v258_v48 = vadd.f32 %v473_v46, %v162_v42  ;;  %v252_v49 = vpop.f32.mrb[3].mxu1 }
 0x1c6   :  { %v265_v50 = vmul.f32 %v261_v45, %v261_v45  ;;  %v253_v51 = vadd.f32 %v252_v49, %v161_v44 }
 0x1c7   :  { %v264_v52 = vmax.f32 %v258_v48, 0.0 }
 0x1c8   :  { %v496_v53 = vpack.c.bf16 %v266_v47, %v265_v50  ;;  %v263_v54 = vmax.f32 %v253_v51, 0.0 }
 0x1c9   :  { %v268_v55 = vmul.f32 %v264_v52, %v264_v52 }
 0x1ca   :  { %v267_v56 = vmul.f32 %v263_v54, %v263_v54  ;;  %497 = vmatprep.subr.bf16.mxu0 %v496_v53 }
 0x1cb   :  { %499 = vmatpush3.bf16.msra.mxu0 %v496_v53 }
 0x1cc   :  { %v500_v57 = vpack.c.bf16 %v268_v55, %v267_v56 }
 0x1ce   :  { %501 = vmatprep.subr.bf16.mxu0 %v500_v57 }
 0x1cf   :  { %503 = vmatpush3.bf16.msra.mxu0 %v500_v57 }
 0x1d2   :  { %483 = vmatmul.mubr.msk.f32.vlgmr.msra.gmra.mrb[4].mxu0 %vm163_vm1, %v270_v58 }
 0x1d3   :  { %485 = vmatprep.mubr.msk.f32.mxu0 %vm163_vm1, %v271_v59 }
 0x1d6   :  { %486 = vmatmul.mubr.msk.f32.gmra.mrb[6].mxu0 %vm163_vm1, %v272_v60 }
 0x2a5   :  { %v484_v63 = vpop.f32.mrb[4].mxu0 }
 0x2a6   :  { %v361_v0 = vadd.f32 %v484_v63, %v274_v61  ;;  %v355_v1 = vpop.f32.mrb[5].mxu0 }
 0x2a7   :  { %v356_v3 = vadd.f32 %v355_v1, %v273_v62 }
 0x2a8   :  { %v375_v5 = vmax.f32 %v361_v0, 0.0 }
 0x2a9   :  { %v374_v8 = vmax.f32 %v356_v3, 0.0  ;;  %v487_v9 = vpop.f32.mrb[6].mxu0 }
 0x2aa   :  { %v383_v10 = vmul.f32 %v379_v2, %v375_v5  ;;  %v371_v11 = vadd.f32 %v487_v9, %v276_v4  ;;  %v365_v12 = vpop.f32.mrb[7].mxu0 }
 0x2ab   :  { %v382_v13 = vmul.f32 %v378_v6, %v374_v8  ;;  %v366_v14 = vadd.f32 %v365_v12, %v275_v7 }
 0x2ac   :  { %v388_v15 = vsel %vm386_vm2, %v383_v10, 0.0  ;;  %v377_v16 = vmax.f32 %v371_v11, 0.0 }
 0x2ad   :  { %v387_v19 = vsel %vm386_vm2, %v382_v13, 0.0  ;;  %v376_v20 = vmax.f32 %v366_v14, 0.0 }
 0x2ae   :  { %v389_v21 = vadd.f32 %v388_v15, %v387_v19  ;;  %v385_v22 = vmul.f32 %v381_v17, %v377_v16 }
 0x2af   :  { %v384_v23 = vmul.f32 %v380_v18, %v376_v20 }
 0x2b0   :  { %v392_v26 = vsel %vm386_vm2, %v385_v22, 0.0 }
 0x2b1   :  { %v390_v24 = vsel %vm386_vm2, %v384_v23, 0.0 }
 0x2b2   :  { %v391_v25 = vadd.f32 %v390_v24, %v389_v21 }
 0x2b4   :  { %v393_v27 = vadd.f32 %v392_v26, %v391_v25 }
 0x2b6   :  { %v394_v28 = vrot.slane %v393_v27, 4 }
 0x2b8   :  { %v395_v29 = vadd.f32 %v394_v28, %v393_v27 }
 0x2ba   :  { %v396_v30 = vrot.slane %v395_v29, 2 }
 0x2bc   :  { %v397_v31 = vadd.f32 %v396_v30, %v395_v29 }
 0x2be   :  { %v398_v32 = vrot.slane %v397_v31, 1 }
 0x2c0   :  { %v399_v34 = vadd.f32 %v398_v32, %v397_v31 }
 0x2c2   :  { %v401_v35 = vadd.f32 %v400_v33, %v399_v34 }
 0x2c4   :  { %403 = vst.msk [vmem:[#allocation2] sm:$0x1] %vm402_vm3, %v401_v35 }
 0x2c5   :  { %516 = shalt.err (!%p513_p4)
}
 0x2c6   :  { %s517_s20 = scalar_lea.hbm %s703_s9, 16 }
 0x2c7   :  { %p518_p5 = scmp.ne.s32.totalorder %s703_s9, %s517_s20  ;;  %p521_p6 = scmp.lt.u32.totalorder %s517_s20, %s703_s9 }
 0x2c9   :  { %p523_p7 = pnand %p521_p6, %p518_p5 }
 0x2cb   :  { %526 = shalt.err (!%p523_p7)
}
 0x2cc   :  { %413 = dma.vmem_to_hbm [thread:$0]  %s411_s3, 16, %s703_s9, [#allocation3]  }
 0x2cd   :  { %527 = dma.done.wait [#allocation3], 16  }
 0x2ce   :  { %528 = vsyncadd [#allocation3], 4294967280 }
 0x2cf   :  { %417 = vsyncpa [#allocation3], 1 }

</bundles_post_ra>
